<compile_context>
chip_gen: v5e
topology: v5e:2x2
jax: 0.10.0
libtpu: 0.0.40
codegen_flags: <defaults>
</compile_context>

<pallas_src>
import numpy as np

import jax
import jax.numpy as jnp
from jax import lax
from jax.experimental import pallas as pl
from jax.experimental.pallas import tpu as pltpu


def _round_up(x, m):
    return ((x + m - 1) // m) * m


def make_interp_indices(n_cores, out_size, out_pad):
    """Compact 1-D linear-interp description (half-pixel / align_corners=False).

    Returns (i0, w1), each of shape (1, out_pad), such that
        out[c, j] = (1 - w1[j]) * cores[c, i0[j]]
                    + w1[j] * cores[c, min(i0[j] + 1, n_cores - 1)]
    Index math is done in float64 so very large sizes don't hit f32 rounding.
    Padded columns (j >= out_size) carry clamped-but-meaningless values; they
    only feed output columns that the wrapper slices off.
    """
    j = np.arange(out_pad, dtype=np.float64)
    src = np.maximum((j + 0.5) * (n_cores / out_size) - 0.5, 0.0)
    i0 = np.floor(src).astype(np.int64)
    w1 = (src - i0).astype(np.float32)
    i0 = np.clip(i0, 0, n_cores - 1).astype(np.int32)
    return i0[None, :], w1[None, :]


def _wave_interp_kernel(cores_ref, i0_ref, w1_ref, out_ref):
    n_cores = cores_ref.shape[1]
    tile_o = out_ref.shape[1]

    i0 = i0_ref[...]                                # (1, tile_o) int32
    w1 = w1_ref[...]                                # (1, tile_o) f32
    i1 = jnp.minimum(i0 + 1, n_cores - 1)

    # Build the bi-diagonal weight slab on the VPU (idle otherwise).
    rows = lax.broadcasted_iota(jnp.int32, (n_cores, tile_o), 0)
    # Right edge: i0 == i1, both selects hit the same row and sum to exactly 1.
    w = jnp.where(rows == i0, 1.0 - w1, 0.0) + jnp.where(rows == i1, w1, 0.0)

    # out[c, j] = sum_n cores[c, n] * w[n, j]
    out_ref[...] = jnp.dot(
        cores_ref[...], w, preferred_element_type=jnp.float32
    ).astype(out_ref.dtype)


def wave_learner_forward(cores, out_size, *, max_tile_o=16384):
    """cores: (n_channels, n_cores) f32 parameter; returns (n_channels, out_size)."""
    n_channels, n_cores = cores.shape

    # ---- Tile / padding selection --------------------------------------
    # Per-column VMEM bytes per step: double-buffered out tile + (i0, w1)
    # tiles, plus the in-kernel weight slab and dot temporaries.
    per_col_bytes = 4 * (2 * n_channels + 2 * 2 + n_cores + n_channels)
    vmem_budget = 24 * 1024 * 1024           # comfortable on v5e/v6e/v7x
    tile_cap = max((vmem_budget // per_col_bytes) // 128 * 128, 128)
    tile_o = min(max_tile_o, tile_cap, _round_up(out_size, 128))
    out_pad = _round_up(out_size, tile_o)    # every store is full-width
    grid = (out_pad // tile_o,)

    i0, w1 = make_interp_indices(n_cores, out_size, out_pad)
    i0 = jnp.asarray(i0)
    w1 = jnp.asarray(w1)

    vmem_needed = per_col_bytes * tile_o + 2 * n_channels * n_cores * 4 + (1 << 20)
    vmem_limit = int(min(max(2 * vmem_needed, 16 << 20), 48 << 20))

    out = pl.pallas_call(
        _wave_interp_kernel,
        out_shape=jax.ShapeDtypeStruct((n_channels, out_pad), cores.dtype),
        grid=grid,
        in_specs=[
            # Tiny parameter block, resident across all output tiles.
            pl.BlockSpec((n_channels, n_cores), lambda i: (0, 0)),
            # Compact per-column interpolation description (8 B / column).
            pl.BlockSpec((1, tile_o), lambda i: (0, i)),
            pl.BlockSpec((1, tile_o), lambda i: (0, i)),
        ],
        out_specs=pl.BlockSpec((n_channels, tile_o), lambda i: (0, i)),
        compiler_params=pltpu.CompilerParams(
            # Independent output-column tiles.  On v7x, pltpu.CORE_PARALLEL on
            # this axis would split columns across the two TensorCores; kept
            # at "parallel" here for portability across generations.
            dimension_semantics=("parallel",),
            vmem_limit_bytes=vmem_limit,
        ),
    )(cores, i0, w1)

    return out[:, :out_size]


def _reference(cores, out_size):
    """Pure-JAX gather-based reference of F.interpolate(..., mode='linear')."""
    n_channels, n_cores = cores.shape
    j = jnp.arange(out_size, dtype=jnp.float32)
    src = jnp.maximum((j + 0.5) * (n_cores / out_size) - 0.5, 0.0)
    i0 = jnp.floor(src).astype(jnp.int32)
    w1 = src - i0.astype(jnp.float32)
    i1 = jnp.minimum(i0 + 1, n_cores - 1)
    return (1.0 - w1)[None, :] * cores[:, i0] + w1[None, :] * cores[:, i1]


if __name__ == "__main__":
    key = jax.random.PRNGKey(0)

    # (n_channels, n_cores, out_size): the small module-consistent shape plus
    # a non-128-multiple out_size that exercises host padding + wrapper slice.
    test_shapes = [(4, 8, 32), (4, 16, 1000)]

    for n_channels, n_cores, out_size in test_shapes:
        key, sub = jax.random.split(key)
        # The module initializes cores to zeros; use deterministic random
        # values instead so the interpolation is actually exercised.
        cores = jax.random.normal(sub, (n_channels, n_cores), dtype=jnp.float32)

        out = wave_learner_forward(cores, out_size)
        out = jax.block_until_ready(out)

        ref = _reference(cores, out_size)
        assert out.shape == (n_channels, out_size)
        assert jnp.allclose(out, ref, atol=1e-5, rtol=1e-5), (
            f"mismatch for shape {(n_channels, n_cores, out_size)}")

    print("KERNEL_OK")
</pallas_src>

<mosaic_0001>
module attributes {stable_mosaic.version = 11 : i64} {
  func.func @_wave_interp_kernel(%arg0: i32, %arg1: memref<4x8xf32, #tpu.memory_space<vmem>>, %arg2: memref<1x128xi32, #tpu.memory_space<vmem>>, %arg3: memref<1x128xf32, #tpu.memory_space<vmem>>, %arg4: memref<4x128xf32, #tpu.memory_space<vmem>>) attributes {dimension_semantics = [#tpu.dimension_semantics<parallel>], iteration_bounds = array<i64: 1>, scalar_prefetch = 0 : i64, scratch_operands = 0 : i64, tpu.core_type = #tpu.core_type<tc>, window_params = [{pipeline_mode = #tpu.pipeline_mode<synchronous>, transform_indices = @transform_0, window_bounds = array<i64: 4, 8>}, {transform_indices = @transform_1, window_bounds = array<i64: 1, 128>}, {transform_indices = @transform_2, window_bounds = array<i64: 1, 128>}, {transform_indices = @transform_3, window_bounds = array<i64: 4, 128>}]} {
    %c0 = arith.constant 0 : index
    %c0_0 = arith.constant 0 : index
    %0 = vector.load %arg2[%c0, %c0_0] : memref<1x128xi32, #tpu.memory_space<vmem>>, vector<1x128xi32>
    %c0_1 = arith.constant 0 : index
    %c0_2 = arith.constant 0 : index
    %1 = vector.load %arg3[%c0_1, %c0_2] : memref<1x128xf32, #tpu.memory_space<vmem>>, vector<1x128xf32>
    %c1_i32 = arith.constant 1 : i32
    %2 = vector.broadcast %c1_i32 : i32 to vector<1x128xi32>
    %3 = arith.addi %0, %2 : vector<1x128xi32>
    %c7_i32 = arith.constant 7 : i32
    %4 = vector.broadcast %c7_i32 : i32 to vector<1x128xi32>
    %5 = arith.minsi %3, %4 : vector<1x128xi32>
    %6 = tpu.iota {dimensions = array<i32: 0>} : vector<8x128xi32>
    %7 = vector.broadcast %0 : vector<1x128xi32> to vector<8x128xi32>
    %8 = arith.cmpi eq, %6, %7 : vector<8x128xi32>
    %cst = arith.constant 1.000000e+00 : f32
    %9 = vector.broadcast %cst : f32 to vector<1x128xf32>
    %10 = arith.subf %9, %1 : vector<1x128xf32>
    %cst_3 = arith.constant 0.000000e+00 : f32
    %11 = vector.shape_cast %10 : vector<1x128xf32> to vector<1x128xf32>
    %12 = vector.broadcast %11 : vector<1x128xf32> to vector<8x128xf32>
    %13 = vector.broadcast %cst_3 : f32 to vector<8x128xf32>
    %14 = arith.select %8, %12, %13 : vector<8x128xi1>, vector<8x128xf32>
    %15 = vector.broadcast %5 : vector<1x128xi32> to vector<8x128xi32>
    %16 = arith.cmpi eq, %6, %15 : vector<8x128xi32>
    %cst_4 = arith.constant 0.000000e+00 : f32
    %17 = vector.shape_cast %1 : vector<1x128xf32> to vector<1x128xf32>
    %18 = vector.broadcast %17 : vector<1x128xf32> to vector<8x128xf32>
    %19 = vector.broadcast %cst_4 : f32 to vector<8x128xf32>
    %20 = arith.select %16, %18, %19 : vector<8x128xi1>, vector<8x128xf32>
    %21 = arith.addf %14, %20 : vector<8x128xf32>
    %c0_5 = arith.constant 0 : index
    %c0_6 = arith.constant 0 : index
    %22 = vector.load %arg1[%c0_5, %c0_6] : memref<4x8xf32, #tpu.memory_space<vmem>>, vector<4x8xf32>
    %cst_7 = arith.constant dense<0.000000e+00> : vector<4x128xf32>
    %23 = tpu.matmul %22, %21, %cst_7 {dimension_numbers = #tpu.dot_dimension_numbers<[1], [0], [0], [1], [0, 0, 1, 1], [], []>} : vector<4x8xf32>, vector<8x128xf32>, vector<4x128xf32> -> vector<4x128xf32>
    %c0_8 = arith.constant 0 : index
    %c0_9 = arith.constant 0 : index
    %24 = vector.load %arg4[%c0_8, %c0_9] : memref<4x128xf32, #tpu.memory_space<vmem>>, vector<4x128xf32>
    tpu.vector_store %arg4[%c0_8, %c0_9], %23 {strides = array<i32>} : memref<4x128xf32, #tpu.memory_space<vmem>>, vector<4x128xf32>,
    return
  }
  func.func @transform_0(%arg0: i32) -> (i32, i32) {
    %c0_i32 = arith.constant 0 : i32
    %c0_i32_0 = arith.constant 0 : i32
    %c0_i32_1 = arith.constant 0 : i32
    return %c0_i32, %c0_i32_0 : i32, i32
  }
  func.func @transform_1(%arg0: i32) -> (i32, i32) {
    %c0_i32 = arith.constant 0 : i32
    %c0_i32_0 = arith.constant 0 : i32
    return %c0_i32, %arg0 : i32, i32
  }
  func.func @transform_2(%arg0: i32) -> (i32, i32) {
    %c0_i32 = arith.constant 0 : i32
    %c0_i32_0 = arith.constant 0 : i32
    return %c0_i32, %arg0 : i32, i32
  }
  func.func @transform_3(%arg0: i32) -> (i32, i32) {
    %c0_i32 = arith.constant 0 : i32
    %c0_i32_0 = arith.constant 0 : i32
    return %c0_i32, %arg0 : i32, i32
  }
}

</mosaic_0001>

<bundles_post_ra>
// kernel: tpu_custom_call.1
= control target key start
LH: loop header
LB: loop body
LE: loop exit
PB: predicated region body
PF: predicated region fallthrough
CT: control target
= control target key end

     0   :  { %8 = vsyncpa [#allocation3], 0  ;;  %s230_s0 = inlined_call_operand.hbm [shape: f32[4,8], index: 0, kind: input, shape index: {}]   ;;  %s231_s1 = inlined_call_operand.hbm [shape: s32[1,128], index: 1, kind: input, shape index: {}]   ;;  %s232_s2 = inlined_call_operand.vmem [shape: f32[1,128], index: 2, kind: input, shape index: {}]   ;;  %s233_s3 = inlined_call_operand.hbm [shape: f32[4,128], index: 3, kind: output, shape index: {}]  }
   0x1   :  { %9 = vsyncpa [#allocation6], 0 }
   0x2   :  { %10 = vsyncpa [#allocation4], 0  ;;  %s16_s14 = sshll.u32 %s230_s0, 4  ;;  %s192_s15 = smov [#allocation2]   ;;  %s17_s14 = int_to_ptr.hbm [resolvable:$true] %s16_s14 }
   0x3   :  { %s18_s16 = sshll.u32 %s192_s15, 4  ;;  %s27_s19 = sshll.u32 %s231_s1, 4  ;;  %s19_s16 = int_to_ptr.vmem [resolvable:$true] %s18_s16  ;;  %s28_s19 = int_to_ptr.hbm [resolvable:$true] %s27_s19 }
   0x4   :  { %21 = dma.hbm_to_vmem [thread:$0]  %s17_s14, 64, %s19_s16, [#allocation3]  }
   0x5   :  { %s193_s20 = smov [#allocation5]  }
   0x6   :  { %s29_s21 = sshll.u32 %s193_s20, 4  ;;  %s30_s21 = int_to_ptr.vmem [resolvable:$true] %s29_s21 }
   0x7   :  { %32 = dma.hbm_to_vmem [thread:$0]  %s28_s19, 16, %s30_s21, [#allocation6]  }
   0x8   :  { %186 = dma.done.wait [#allocation3], 64  }
   0x9   :  { %187 = vsyncadd [#allocation3], 4294967232 }
   0xa   :  { %188 = dma.done.wait [#allocation6], 16  }
   0xb   :  { %189 = vsyncadd [#allocation6], 4294967280  ;;  %v48_v0 = vlaneseq  ;;  %v43_v2 = vld [vmem:[#allocation5] sm:$0x1]  ;;  %v44_v3 = vld [vmem:[%s232_s2] sm:$0x1] }
   0xc   :  { %v112_v4 = vld [vmem:[#allocation5] ss:$0 sm:$0xff]  ;;  %v45_v5 = vadd.s32 1, %v43_v2  ;;  %v52_v6 = vsub.f32 1.0, %v44_v3  ;;  %v113_v9 = vld [vmem:[%s232_s2] ss:$0 sm:$0xff] }
   0xd   :  { %v49_v1 = vshrl.u32 %v48_v0, 7  ;;  %v64_v14 = vld [vmem:[#allocation2] sm:$0xf]  ;;  %vm65_vm3 = vcmask 64512   ;;  %s194_s24 = smov [#allocation7]   ;;  %s97_s28 = sshll.u32 %s233_s3, 4  ;;  %s98_s28 = int_to_ptr.hbm [resolvable:$true] %s97_s28 }
   0xe   :  { %vm46_vm0 = vcmp.lt.s32.totalorder %v45_v5, 7  ;;  %v54_v7 = vperm.slane %v52_v6, 0  ;;  %s95_s25 = sshll.u32 %s194_s24, 4  ;;  %s96_s25 = int_to_ptr.vmem [resolvable:$true] %s95_s25 }
   0xf   :  { %vm51_vm1 = vcmp.eq.s32.totalorder %v49_v1, %v112_v4  ;;  %v47_v8 = vsel %vm46_vm0, %v45_v5, 7 }
  0x10   :  { %v57_v10 = vperm.slane %v47_v8, 0  ;;  %v56_v11 = vsel %vm51_vm1, %v54_v7, 0.0 }
  0x12   :  { %vm58_vm2 = vcmp.eq.s32.totalorder %v49_v1, %v57_v10 }
  0x13   :  { %v62_v12 = vsel %vm58_vm2, %v113_v9, 0.0 }
  0x14   :  { %v63_v13 = vadd.f32 %v62_v12, %v56_v11 }
  0x16   :  { %84 = vmatpush.msra.mxu0 %v63_v13 }
  0x17   :  { %108 = vmatmul.msk.f32.vlgmr.msra.gmra.mxu0 %vm65_vm3, %v64_v14 }
  0x94   :  { %v86_v15 = vpop.f32.mrf.mxu0 }
  0x95   :  { %89 = vst [vmem:[#allocation7] sm:$0xf] %v86_v15 }
  0x96   :  { %100 = dma.vmem_to_hbm [thread:$0]  %s96_s25, 64, %s98_s28, [#allocation4]  }
  0x97   :  { %190 = dma.done.wait [#allocation4], 64  }
  0x98   :  { %191 = vsyncadd [#allocation4], 4294967232 }
  0x99   :  { %105 = vsyncpa [#allocation3], 1 }
  0x9a   :  { %106 = vsyncpa [#allocation6], 1 }
  0x9b   :  { %107 = vsyncpa [#allocation4], 1 }

</bundles_post_ra>
